<compile_context>
chip_gen: v6e
topology: v6e:2x2x1
jax: 0.10.0
libtpu: 0.0.40
codegen_flags: <defaults>
</compile_context>

<pallas_src>
import jax
import jax.numpy as jnp
from jax.experimental import pallas as pl
from jax.experimental.pallas import tpu as pltpu

_VMEM_BUDGET_BYTES = 24 << 20   # per-step working-set target for tile sizing
_VMEM_LIMIT_BYTES = 32 << 20    # scoped VMEM we request; safe on v5e/v6e/v7x


def _attention_kernel(x_ref, w_ref, o_ref):
    # x_ref: (TB, S, E) slab of batch rows (dominant HBM read)
    # w_ref: (1, E)     Linear weight, torch layout (constant across the grid)
    # o_ref: (TB, S)    lane-dense softmax weights (reshaped to (B,S,1) outside)
    w = w_ref[...].astype(x_ref.dtype)                     # (1, E) -> bcast (1,1,E)

    # E -> 1 projection on the VPU: multiply in the input dtype (bf16 stays
    # bf16 on v6e/v7x), accumulate the lane reduce over E in f32.  No MXU for
    # a single output column.  Linear bias omitted: softmax over S is
    # shift-invariant, so a per-row scalar bias cannot change the output.
    prod = x_ref[...] * w                                   # (TB, S, E)
    logits = jnp.sum(prod, axis=-1, dtype=jnp.float32)      # (TB, S)

    # Numerically-stable softmax over the sequence axis (S on lanes).
    m = jnp.max(logits, axis=-1, keepdims=True)             # (TB, 1)
    e = jnp.exp(logits - m)                                 # (TB, S)  EUP
    s = jnp.sum(e, axis=-1, keepdims=True)                  # (TB, 1)
    # Exact reciprocal of the tiny denominator vector so rows sum to 1 within
    # f32 rounding (the approx EUP reciprocal was only good to ~1e-3).
    inv = 1.0 / s                                           # (TB, 1)
    o_ref[...] = (e * inv).astype(o_ref.dtype)


def _pick_block_b(B, S, E, in_itemsize):
    """Largest legal batch tile that fits the VMEM budget.

    Legality: block_b divides B and, for the (block_b, S) output tile, the
    sublane dim (block_b) is a multiple of 8 or spans the full batch.
    Budget: 2x double-buffered input tile + an f32-sized in-kernel temporary.
    Preference: keep >= 2 grid steps so the "parallel" batch axis can shard
    across the two TensorCores on v7x.
    """
    per_row = S * E * (2 * in_itemsize + 4) + 2 * S * 4
    cands = [d for d in range(1, B + 1)
             if B % d == 0 and (d % 8 == 0 or d == B)]
    fitting = [d for d in cands if d * per_row <= _VMEM_BUDGET_BYTES]
    if not fitting:
        # Nothing fits the budget (huge prime-ish B*S*E); take the smallest
        # legal tile and rely on the explicit vmem_limit below.
        fitting = [min(cands)]
    sharded = [d for d in fitting if d <= B // 2]
    return max(sharded) if sharded else max(fitting)


def attention_forward(x, weight, bias=None, *, block_b=None):
    """Pallas forward of DiffTraj's Attention module.

    x:      (B, S, E)
    weight: (1, E)  nn.Linear(E, 1) weight in torch layout (no transpose).
    bias:   accepted but ignored: softmax over dim=1 is shift-invariant, so
            the Linear bias provably cannot change the returned weights.
    Returns (B, S, 1) attention weights that sum to 1 over S.
    """
    del bias  # softmax over the sequence axis cancels any per-row constant
    B, S, E = x.shape

    if block_b is None:
        block_b = _pick_block_b(B, S, E, x.dtype.itemsize)
    else:
        if B % block_b != 0:
            raise ValueError(f"block_b={block_b} must divide B={B}")
        if block_b % 8 != 0 and block_b != B:
            raise ValueError(
                "block_b must be a multiple of 8 or equal to B so the "
                "(block_b, S) output tile satisfies the (8,128) tiling rule")

    out2d = pl.pallas_call(
        _attention_kernel,
        out_shape=jax.ShapeDtypeStruct((B, S), x.dtype),
        grid_spec=pltpu.PrefetchScalarGridSpec(
            num_scalar_prefetch=0,
            grid=(B // block_b,),
            in_specs=[
                pl.BlockSpec((block_b, S, E), lambda i: (i, 0, 0)),
                # Constant block index across the grid: fetched once.
                pl.BlockSpec((1, E), lambda i: (0, 0)),
            ],
            out_specs=pl.BlockSpec((block_b, S), lambda i: (i, 0)),
        ),
        compiler_params=pltpu.CompilerParams(
            dimension_semantics=("parallel",),
            vmem_limit_bytes=_VMEM_LIMIT_BYTES,
        ),
    )(x, weight)

    # Lane-dense (B, S) slab -> module's (B, S, 1) output shape (free reshape).
    return out2d.reshape(B, S, 1)


def attention_ref(x, weight, bias):
    # Pure-JAX reference mirroring the PyTorch module (bias included).
    logits = jnp.einsum("bse,oe->bso", x, weight) + bias  # (B, S, 1)
    return jax.nn.softmax(logits, axis=1)


if __name__ == "__main__":
    B, S, E = 2, 8, 32

    key = jax.random.PRNGKey(0)
    kx, kw, kb = jax.random.split(key, 3)

    x = jax.random.normal(kx, (B, S, E), dtype=jnp.float32)

    # Deterministic init mimicking nn.Linear(E, 1): U(-1/sqrt(E), 1/sqrt(E))
    bound = 1.0 / (E ** 0.5)
    weight = jax.random.uniform(kw, (1, E), minval=-bound, maxval=bound,
                                dtype=jnp.float32)
    bias = jax.random.uniform(kb, (1,), minval=-bound, maxval=bound,
                              dtype=jnp.float32)

    out = attention_forward(x, weight, bias)
    out = jax.block_until_ready(out)

    ref = attention_ref(x, weight, bias)
    assert out.shape == (B, S, 1)
    # Bias-free kernel matches the biased reference (softmax shift-invariance).
    assert jnp.allclose(out, ref, atol=1e-4, rtol=1e-4)
    # Exact normalization: each row's weights sum to 1 over the sequence axis.
    assert jnp.allclose(out.sum(axis=1), 1.0, atol=1e-4)

    print("KERNEL_OK")
</pallas_src>

<mosaic_0001>
module attributes {stable_mosaic.version = 11 : i64} {
  func.func @_attention_kernel(%arg0: i32, %arg1: memref<2x8x32xf32, #tpu.memory_space<vmem>>, %arg2: memref<1x32xf32, #tpu.memory_space<vmem>>, %arg3: memref<2x8xf32, #tpu.memory_space<vmem>>) attributes {dimension_semantics = [#tpu.dimension_semantics<parallel>], iteration_bounds = array<i64: 1>, scalar_prefetch = 0 : i64, scratch_operands = 0 : i64, tpu.core_type = #tpu.core_type<tc>, window_params = [{transform_indices = @transform_0, window_bounds = array<i64: 2, 8, 32>}, {pipeline_mode = #tpu.pipeline_mode<synchronous>, transform_indices = @transform_1, window_bounds = array<i64: 1, 32>}, {transform_indices = @transform_2, window_bounds = array<i64: 2, 8>}]} {
    %c0 = arith.constant 0 : index
    %c0_0 = arith.constant 0 : index
    %0 = vector.load %arg2[%c0, %c0_0] : memref<1x32xf32, #tpu.memory_space<vmem>>, vector<1x32xf32>
    %c0_1 = arith.constant 0 : index
    %c0_2 = arith.constant 0 : index
    %c0_3 = arith.constant 0 : index
    %1 = vector.load %arg1[%c0_1, %c0_2, %c0_3] : memref<2x8x32xf32, #tpu.memory_space<vmem>>, vector<2x8x32xf32>
    %2 = vector.shape_cast %0 : vector<1x32xf32> to vector<1x1x32xf32>
    %3 = vector.broadcast %2 : vector<1x1x32xf32> to vector<2x8x32xf32>
    %4 = arith.mulf %1, %3 : vector<2x8x32xf32>
    %cst = arith.constant dense<0.000000e+00> : vector<2x8xf32>
    %5 = vector.multi_reduction <add>, %4, %cst [2] : vector<2x8x32xf32> to vector<2x8xf32>
    %cst_4 = arith.constant dense<0xFF800000> : vector<2xf32>
    %6 = vector.multi_reduction <maximumf>, %5, %cst_4 [1] : vector<2x8xf32> to vector<2xf32>
    %7 = vector.shape_cast %6 : vector<2xf32> to vector<2x1xf32>
    %8 = vector.broadcast %7 : vector<2x1xf32> to vector<2x8xf32>
    %9 = arith.subf %5, %8 : vector<2x8xf32>
    %10 = math.exp %9 : vector<2x8xf32>
    %cst_5 = arith.constant dense<0.000000e+00> : vector<2xf32>
    %11 = vector.multi_reduction <add>, %10, %cst_5 [1] : vector<2x8xf32> to vector<2xf32>
    %12 = vector.shape_cast %11 : vector<2xf32> to vector<2x1xf32>
    %cst_6 = arith.constant 1.000000e+00 : f32
    %13 = vector.broadcast %cst_6 : f32 to vector<2x1xf32>
    %14 = arith.divf %13, %12 : vector<2x1xf32>
    %15 = vector.broadcast %14 : vector<2x1xf32> to vector<2x8xf32>
    %16 = arith.mulf %10, %15 : vector<2x8xf32>
    %c0_7 = arith.constant 0 : index
    %c0_8 = arith.constant 0 : index
    %17 = vector.load %arg3[%c0_7, %c0_8] : memref<2x8xf32, #tpu.memory_space<vmem>>, vector<2x8xf32>
    tpu.vector_store %arg3[%c0_7, %c0_8], %16 {strides = array<i32>} : memref<2x8xf32, #tpu.memory_space<vmem>>, vector<2x8xf32>,
    return
  }
  func.func @transform_0(%arg0: i32) -> (i32, i32, i32) {
    %c0_i32 = arith.constant 0 : i32
    %c0_i32_0 = arith.constant 0 : i32
    %c0_i32_1 = arith.constant 0 : i32
    return %arg0, %c0_i32, %c0_i32_0 : i32, i32, i32
  }
  func.func @transform_1(%arg0: i32) -> (i32, i32) {
    %c0_i32 = arith.constant 0 : i32
    %c0_i32_0 = arith.constant 0 : i32
    %c0_i32_1 = arith.constant 0 : i32
    return %c0_i32, %c0_i32_0 : i32, i32
  }
  func.func @transform_2(%arg0: i32) -> (i32, i32) {
    %c0_i32 = arith.constant 0 : i32
    %c0_i32_0 = arith.constant 0 : i32
    return %arg0, %c0_i32 : i32, i32
  }
}

</mosaic_0001>

<bundles_post_ra>
// kernel: tpu_custom_call.1
= control target key start
LH: loop header
LB: loop body
LE: loop exit
PB: predicated region body
PF: predicated region fallthrough
CT: control target
= control target key end

     0   :  { %7 = vsyncpa [#allocation3], 0  ;;  %s243_s0 = inlined_call_operand.hbm [shape: f32[2,8,32], index: 0, kind: input, shape index: {}]   ;;  %s244_s1 = inlined_call_operand.vmem [shape: f32[1,32], index: 1, kind: input, shape index: {}]   ;;  %s245_s2 = inlined_call_operand.hbm [shape: f32[2,8], index: 2, kind: output, shape index: {}]  }
   0x1   :  { %8 = vsyncpa [#allocation4], 0  ;;  %s208_s9 = smov [#allocation2]  }
   0x2   :  { %s14_s10 = sshll.u32 %s208_s9, 4  ;;  %s15_s10 = int_to_ptr.vmem [resolvable:$true] %s14_s10 }
   0x3   :  { %s172_s11 = scalar_lea.vmem %s15_s10, 256  ;;  %p177_p1 = scmp.lt.s32.totalorder %s15_s10, %s15_s10 }
   0x4   :  { %p173_p0 = scmp.ne.s32.totalorder %s15_s10, %s172_s11  ;;  %p178_p2 = scmp.lt.s32.totalorder %s172_s11, %s172_s11 }
   0x6   :  { %p179_p3 = por %p178_p2, %p177_p1 }
   0x8   :  { %p180_p4 = pnand %p179_p3, %p173_p0 }
   0xa   :  { %183 = shalt.err (!%p180_p4)
}
   0xb   :  { %s209_s12 = smov 128   ;;  %s210_s13 = smov 8  }
   0xc   :  { %20 = dma.hbm_to_vmem [thread:$0]  %s243_s0, 256, %s15_s10, [#allocation3], %s209_s12, %s209_s12, %s210_s13  }
   0xd   :  { %204 = dma.done.wait [#allocation3], 256  }
   0xe   :  { %205 = vsyncadd [#allocation3], 4294967040  ;;  %v150_v0 = vld [vmem:[%s244_s1] ss:$0 sm:$0xff]  ;;  %vm37_vm0 = vcmask 261120   ;;  %v28_v2 = vld [vmem:[#allocation2 + $0x8] sm:$0xff]  ;;  %v46_v7 = vlaneseq }
   0xf   :  { %v27_v1 = vld [vmem:[#allocation2] sm:$0xff]  ;;  %v36_v4 = vmul.f32 %v150_v0, %v28_v2  ;;  %vm56_vm1 = vcmask 1041409   ;;  %vm59_vm2 = vcmask 58368   ;;  %v211_v17 = vmov 0   ;;  %s212_s0 = smov [#allocation5]  }
  0x10   :  { %v35_v3 = vmul.f32 %v150_v0, %v27_v1  ;;  %v47_v8 = vand.u32 127, %v46_v7  ;;  %v49_v9 = vshrl.u32 %v46_v7, 7  ;;  %157 = vset.pattern.permute.xlu0 %v211_v17  ;;  %156 = vset.pattern.permute.xlu1 %v211_v17  ;;  %s141_s1 = sshll.u32 %s212_s0, 4  ;;  %s142_s1 = int_to_ptr.vmem [resolvable:$true] %s141_s1 }
  0x11   :  { %v41_v6 = vsel %vm37_vm0, %v36_v4, 0.0  ;;  %s184_s18 = scalar_lea.vmem %s142_s1, 32  ;;  %p189_p6 = scmp.lt.s32.totalorder %s142_s1, %s142_s1 }
  0x12   :  { %v38_v5 = vsel %vm37_vm0, %v35_v3, 0.0  ;;  %v50_v11 = vsub.s32 %v47_v8, %v49_v9  ;;  %v66_v18 = vsub.s32 0, %v49_v9  ;;  %v70_v19 = vsub.s32 1, %v49_v9  ;;  %p185_p5 = scmp.ne.s32.totalorder %s142_s1, %s184_s18  ;;  %p190_p7 = scmp.lt.s32.totalorder %s184_s18, %s184_s18 }
  0x13   :  { %39 = vadd.xlane.f32.xlu0 %v38_v5 }
  0x14   :  { %p191_p8 = por %p190_p7, %p189_p6 }
  0x16   :  { %p192_p9 = pnand %p191_p8, %p185_p5 }
  0x17   :  { %42 = vadd.xlane.f32.xlu0 %v41_v6 }
  0x9c   :  { %v40_v10 = vpop.xlane.xlu0 %39 }
  0x9d   :  { %v51_v13 = vrot.slane %v40_v10, %v50_v11 }
  0xa0   :  { %v43_v12 = vpop.xlane.xlu0 %42 }
  0xa1   :  { %v55_v14 = vrot.slane %v43_v12, %v50_v11 }
  0xa3   :  { %v57_v15 = vsel %vm56_vm1, %v55_v14, %v51_v13 }
  0xa4   :  { %v60_v16 = vsel %vm59_vm2, %v57_v15, -inf }
  0xa5   :  { %61 = vmax.xlane.f32.xlu1 %v60_v16 }
 0x12e   :  { %v62_v20 = vpop.xlane.xlu1 %61 }
 0x12f   :  { %v67_v21 = vrot.slane %v62_v20, %v66_v18  ;;  %v71_v22 = vrot.slane %v62_v20, %v70_v19 }
 0x131   :  { %v74_v23 = vsub.f32 %v40_v10, %v67_v21  ;;  %v75_v24 = vsub.f32 %v43_v12, %v71_v22 }
 0x133   :  { %v76_v25 = vmul.f32 1.442695, %v74_v23  ;;  %v78_v26 = vmul.f32 1.442695, %v75_v24 }
 0x135   :  { %158 = vpow2.f32 %v76_v25 }
 0x136   :  { %160 = vpow2.f32 %v78_v26 }
 0x142   :  { %v159_v27 = vpop.eup %158 }
 0x143   :  { %v161_v28 = vpop.eup %160  ;;  %83 = vperm.xlu1 %156, %v159_v27  }
 0x144   :  { %86 = vperm.xlu0 %157, %v161_v28  }
 0x1be   :  { %v84_v29 = vpop.permute.xlu1 %83 }
 0x1bf   :  { %v87_v30 = vpop.permute.xlu0 %86  ;;  %v91_v31 = vrot.slane %v84_v29, %v50_v11 }
 0x1c0   :  { %v95_v32 = vrot.slane %v87_v30, %v50_v11 }
 0x1c2   :  { %v96_v33 = vsel %vm56_vm1, %v95_v32, %v91_v31 }
 0x1c3   :  { %v98_v34 = vsel %vm59_vm2, %v96_v33, 0.0 }
 0x1c4   :  { %99 = vadd.xlane.f32.xlu1 %v98_v34 }
 0x24d   :  { %v100_v35 = vpop.xlane.xlu1 %99 }
 0x24e   :  { %162 = vrcp.f32 %v100_v35 }
 0x25b   :  { %v163_v36 = vpop.eup %162 }
 0x25c   :  { %v107_v37 = vrot.slane %v163_v36, %v66_v18  ;;  %v111_v39 = vrot.slane %v163_v36, %v70_v19 }
 0x25e   :  { %v114_v38 = vmul.f32 %v159_v27, %v107_v37  ;;  %v115_v40 = vmul.f32 %v161_v28, %v111_v39 }
 0x260   :  { %119 = vperm.xlu0 %157, %v114_v38  }
 0x264   :  { %122 = vperm.xlu0 %157, %v115_v40  }
 0x2db   :  { %v120_v41 = vpop.permute.xlu0 %119 }
 0x2dc   :  { %v127_v43 = vrot.slane %v120_v41, %v50_v11 }
 0x2df   :  { %v123_v42 = vpop.permute.xlu0 %122 }
 0x2e0   :  { %v131_v44 = vrot.slane %v123_v42, %v50_v11 }
 0x2e2   :  { %v132_v45 = vsel %vm56_vm1, %v131_v44, %v127_v43 }
 0x2e3   :  { %134 = vst.msk [vmem:[#allocation5] sm:$0x3] %vm59_vm2, %v132_v45 }
 0x2e4   :  { %195 = shalt.err (!%p192_p9)
}
 0x2e5   :  { %144 = dma.vmem_to_hbm [thread:$0]  %s142_s1, 32, %s245_s2, [#allocation4]  }
 0x2e6   :  { %206 = dma.done.wait [#allocation4], 32  }
 0x2e7   :  { %207 = vsyncadd [#allocation4], 4294967264 }
 0x2e8   :  { %148 = vsyncpa [#allocation3], 1 }
 0x2e9   :  { %149 = vsyncpa [#allocation4], 1 }

</bundles_post_ra>
